<compile_context>
chip_gen: v5e
topology: v5e:2x2
jax: 0.10.0
libtpu: 0.0.40
codegen_flags: <defaults>
</compile_context>

<pallas_src>
import functools

import jax
import jax.numpy as jnp
from jax.experimental import pallas as pl
from jax.experimental.pallas import tpu as pltpu


def _round_up(n, m):
    return ((n + m - 1) // m) * m


def sffa_kernel(x_ref, wproj_ref, bproj_ref, w_chwz_ref, aux_ref, o_ref,
                *, c2, off_q, off_sv, off_sq):
    x = x_ref[...]                                              # (C, HW)

    # ---- fused projections: one MXU matmul (Nf, C) @ (C, HW) -> (Nf, HW) ----
    proj = jnp.dot(wproj_ref[...], x,
                   preferred_element_type=jnp.float32) + bproj_ref[...]
    v = proj[0:c2, :]                                            # ch_wv  (C2, HW)
    q = proj[off_q:off_q + 1, :]                                 # ch_wq  (1,  HW)
    sv = proj[off_sv:off_sv + c2, :]                             # sp_wv  (C2, HW)
    sq = proj[off_sq:off_sq + c2, :]                             # sp_wq  (C2, HW)

    aux = aux_ref[...]                                           # (C, 3)
    b_chwz = aux[:, 0:1]
    ln_g = aux[:, 1:2]
    ln_b = aux[:, 2:3]

    # ---- Channel-only branch ----
    # softmax over spatial (lane dim)
    q = q - jnp.max(q, axis=-1, keepdims=True)
    q = jnp.exp(q)
    q = q / jnp.sum(q, axis=-1, keepdims=True)                   # (1, HW)
    # rank-1 contraction over HW as broadcast-mul + lane reduce (VPU/XLU)
    z = jnp.sum(v * q, axis=-1, keepdims=True)                   # (C2, 1)
    # ch_wz: 1x1 conv C/2 -> C (tiny matmul)
    z = jnp.dot(w_chwz_ref[...], z,
                preferred_element_type=jnp.float32) + b_chwz     # (C, 1)
    # LayerNorm over channel dim (eps=1e-5, biased variance)
    mu = jnp.mean(z, axis=0, keepdims=True)
    var = jnp.mean((z - mu) ** 2, axis=0, keepdims=True)
    zn = (z - mu) * jax.lax.rsqrt(var + 1e-5) * ln_g + ln_b
    channel_weight = jax.nn.sigmoid(zn)                          # (C, 1)

    # ---- Spatial-only branch ----
    sq_pool = jnp.mean(sq, axis=-1, keepdims=True)               # (C2, 1)
    # rank-1 contraction over C/2 as broadcast-mul + sublane reduce
    sz = jnp.sum(sv * sq_pool, axis=0, keepdims=True)            # (1, HW)
    spatial_weight = jax.nn.sigmoid(sz)                          # (1, HW)

    # channel_weight*x + spatial_weight*x == (channel_weight + spatial_weight)*x
    out = (channel_weight + spatial_weight) * x                  # (C, HW)
    o_ref[...] = out.astype(o_ref.dtype)


def second_feature_filtering_att(x_nchw, params):
    (w_chwv, b_chwv, w_chwq, b_chwq, w_chwz, b_chwz,
     ln_g, ln_b, w_spwv, b_spwv, w_spwq, b_spwq) = params
    b, c, h, w = x_nchw.shape
    hw = h * w
    c2 = c // 2

    # NCHW -> (B, C, HW); lane dim = HW (dense, multiple of 128 for the demo).
    x = x_nchw.reshape(b, c, hw)

    # ---- fuse the four 1x1-conv projections into one (Nf, C) weight ----
    # Segments padded to multiples of 8 sublanes so in-kernel row slices are
    # tile aligned.
    s_v = _round_up(c2, 8)
    s_q = 8
    s_sv = _round_up(c2, 8)
    off_q = s_v
    off_sv = s_v + s_q
    off_sq = s_v + s_q + s_sv
    nf = off_sq + _round_up(c2, 8)

    wproj = jnp.zeros((nf, c), jnp.float32)
    wproj = wproj.at[0:c2].set(w_chwv)
    wproj = wproj.at[off_q:off_q + 1].set(w_chwq)
    wproj = wproj.at[off_sv:off_sv + c2].set(w_spwv)
    wproj = wproj.at[off_sq:off_sq + c2].set(w_spwq)

    bproj = jnp.zeros((nf, 1), jnp.float32)
    bproj = bproj.at[0:c2, 0].set(b_chwv)
    bproj = bproj.at[off_q, 0].set(b_chwq[0])
    bproj = bproj.at[off_sv:off_sv + c2, 0].set(b_spwv)
    bproj = bproj.at[off_sq:off_sq + c2, 0].set(b_spwq)

    # pack the three per-channel column vectors into one operand (C, 3)
    aux = jnp.stack([b_chwz, ln_g, ln_b], axis=-1)

    kernel = functools.partial(sffa_kernel, c2=c2,
                               off_q=off_q, off_sv=off_sv, off_sq=off_sq)

    def full(shape):
        return pl.BlockSpec(shape, lambda i: (0,) * len(shape))

    # TODO(synk): for very large HW*C on v7x (64 MiB VMEM), add an inner HW
    # grid axis with two-pass softmax/mean reductions; unnecessary at these
    # shapes (whole-HW-per-batch blocks are tiny).
    out = pl.pallas_call(
        kernel,
        out_shape=jax.ShapeDtypeStruct((b, c, hw), x.dtype),
        grid=(b,),
        in_specs=[
            pl.BlockSpec((None, c, hw), lambda i: (i, 0, 0)),   # x, per-batch
            full((nf, c)),                                      # fused proj W
            full((nf, 1)),                                      # fused proj b
            full((c, c2)),                                      # ch_wz weight
            full((c, 3)),                                       # b_chwz | ln_g | ln_b
        ],
        out_specs=pl.BlockSpec((None, c, hw), lambda i: (i, 0, 0)),
        compiler_params=pltpu.CompilerParams(
            dimension_semantics=("parallel",)),
    )(x, wproj, bproj, w_chwz, aux)

    return out.reshape(b, c, h, w)


def init_params(key, c):
    """Parameters in PyTorch Conv2d (out, in) layout."""
    c2 = c // 2
    ks = jax.random.split(key, 10)

    def rnd(k, shape, scale=0.2):
        return jax.random.normal(k, shape, jnp.float32) * scale

    w_chwv = rnd(ks[0], (c2, c)); b_chwv = rnd(ks[1], (c2,))
    w_chwq = rnd(ks[2], (1, c));  b_chwq = rnd(ks[3], (1,))
    w_chwz = rnd(ks[4], (c, c2)); b_chwz = rnd(ks[5], (c,))
    ln_g = jnp.ones((c,), jnp.float32)
    ln_b = jnp.zeros((c,), jnp.float32)
    w_spwv = rnd(ks[6], (c2, c)); b_spwv = rnd(ks[7], (c2,))
    w_spwq = rnd(ks[8], (c2, c)); b_spwq = rnd(ks[9], (c2,))
    return (w_chwv, b_chwv, w_chwq, b_chwq, w_chwz, b_chwz,
            ln_g, ln_b, w_spwv, b_spwv, w_spwq, b_spwq)


def reference_jax(x_nchw, params):
    """Pure-JAX reference mirroring the PyTorch forward (NCHW)."""
    (w_chwv, b_chwv, w_chwq, b_chwq, w_chwz, b_chwz,
     ln_g, ln_b, w_spwv, b_spwv, w_spwq, b_spwq) = params
    b, c, h, w = x_nchw.shape
    hw = h * w
    x = x_nchw.reshape(b, c, hw)                                         # (B,C,HW)

    # Channel_only_branch
    v = jnp.einsum('oc,bcs->bos', w_chwv, x) + b_chwv[None, :, None]     # (B,C2,HW)
    q = jnp.einsum('oc,bcs->bos', w_chwq, x) + b_chwq[None, :, None]     # (B,1,HW)
    q = jax.nn.softmax(q, axis=-1)                                       # softmax over HW
    z = jnp.sum(v * q, axis=-1)                                          # (B,C2)
    z = jnp.einsum('ok,bk->bo', w_chwz, z) + b_chwz[None, :]             # (B,C)
    mu = jnp.mean(z, -1, keepdims=True)
    var = jnp.mean((z - mu) ** 2, -1, keepdims=True)
    zn = (z - mu) / jnp.sqrt(var + 1e-5) * ln_g[None, :] + ln_b[None, :]
    cw = jax.nn.sigmoid(zn)                                              # (B,C)
    ch_out = cw[:, :, None] * x

    # Spatial_only_branch
    sv = jnp.einsum('oc,bcs->bos', w_spwv, x) + b_spwv[None, :, None]    # (B,C2,HW)
    sq = jnp.einsum('oc,bcs->bos', w_spwq, x) + b_spwq[None, :, None]
    sqp = jnp.mean(sq, axis=-1)                                          # (B,C2)
    sz = jnp.einsum('bk,bks->bs', sqp, sv)                               # (B,HW)
    sw = jax.nn.sigmoid(sz)
    sp_out = sw[:, None, :] * x

    return (ch_out + sp_out).reshape(b, c, h, w)


if __name__ == "__main__":
    B, C, H, W = 2, 8, 16, 16
    key = jax.random.PRNGKey(0)
    kx, kp = jax.random.split(key)
    x = jax.random.normal(kx, (B, C, H, W), jnp.float32)
    params = init_params(kp, C)

    out = jax.block_until_ready(second_feature_filtering_att(x, params))

    ref = reference_jax(x, params)
    assert out.shape == (B, C, H, W)
    assert jnp.allclose(out, ref, atol=1e-4, rtol=1e-4), "mismatch vs JAX reference"

    print("KERNEL_OK")
</pallas_src>

<mosaic_0001>
module attributes {stable_mosaic.version = 11 : i64} {
  func.func @sffa_kernel(%arg0: i32, %arg1: memref<1x8x256xf32, #tpu.memory_space<vmem>>, %arg2: memref<32x8xf32, #tpu.memory_space<vmem>>, %arg3: memref<32x1xf32, #tpu.memory_space<vmem>>, %arg4: memref<8x4xf32, #tpu.memory_space<vmem>>, %arg5: memref<8x3xf32, #tpu.memory_space<vmem>>, %arg6: memref<1x8x256xf32, #tpu.memory_space<vmem>>) attributes {dimension_semantics = [#tpu.dimension_semantics<parallel>], iteration_bounds = array<i64: 2>, scalar_prefetch = 0 : i64, scratch_operands = 0 : i64, tpu.core_type = #tpu.core_type<tc>, window_params = [{transform_indices = @transform_0, window_bounds = array<i64: 1, 8, 256>}, {pipeline_mode = #tpu.pipeline_mode<synchronous>, transform_indices = @transform_1, window_bounds = array<i64: 32, 8>}, {pipeline_mode = #tpu.pipeline_mode<synchronous>, transform_indices = @transform_2, window_bounds = array<i64: 32, 1>}, {pipeline_mode = #tpu.pipeline_mode<synchronous>, transform_indices = @transform_3, window_bounds = array<i64: 8, 4>}, {pipeline_mode = #tpu.pipeline_mode<synchronous>, transform_indices = @transform_4, window_bounds = array<i64: 8, 3>}, {transform_indices = @transform_5, window_bounds = array<i64: 1, 8, 256>}]} {
    %c0 = arith.constant 0 : index
    %c0_0 = arith.constant 0 : index
    %c0_1 = arith.constant 0 : index
    %0 = vector.load %arg1[%c0, %c0_0, %c0_1] : memref<1x8x256xf32, #tpu.memory_space<vmem>>, vector<1x8x256xf32>
    %1 = vector.shape_cast %0 : vector<1x8x256xf32> to vector<8x256xf32>
    %c0_2 = arith.constant 0 : index
    %c0_3 = arith.constant 0 : index
    %2 = vector.load %arg2[%c0_2, %c0_3] : memref<32x8xf32, #tpu.memory_space<vmem>>, vector<32x8xf32>
    %cst = arith.constant dense<0.000000e+00> : vector<32x256xf32>
    %3 = tpu.matmul %2, %1, %cst {dimension_numbers = #tpu.dot_dimension_numbers<[1], [0], [0], [1], [0, 0, 1, 1], [], []>} : vector<32x8xf32>, vector<8x256xf32>, vector<32x256xf32> -> vector<32x256xf32>
    %c0_4 = arith.constant 0 : index
    %c0_5 = arith.constant 0 : index
    %4 = vector.load %arg3[%c0_4, %c0_5] : memref<32x1xf32, #tpu.memory_space<vmem>>, vector<32x1xf32>
    %5 = vector.broadcast %4 : vector<32x1xf32> to vector<32x256xf32>
    %6 = arith.addf %3, %5 : vector<32x256xf32>
    %7 = vector.extract_strided_slice %6 {offsets = [0, 0], sizes = [4, 256], strides = [1, 1]} : vector<32x256xf32> to vector<4x256xf32>
    %8 = vector.extract_strided_slice %6 {offsets = [8, 0], sizes = [1, 256], strides = [1, 1]} : vector<32x256xf32> to vector<1x256xf32>
    %9 = vector.extract_strided_slice %6 {offsets = [16, 0], sizes = [4, 256], strides = [1, 1]} : vector<32x256xf32> to vector<4x256xf32>
    %10 = vector.extract_strided_slice %6 {offsets = [24, 0], sizes = [4, 256], strides = [1, 1]} : vector<32x256xf32> to vector<4x256xf32>
    %c0_6 = arith.constant 0 : index
    %c0_7 = arith.constant 0 : index
    %11 = vector.load %arg5[%c0_6, %c0_7] : memref<8x3xf32, #tpu.memory_space<vmem>>, vector<8x3xf32>
    %12 = vector.extract_strided_slice %11 {offsets = [0, 0], sizes = [8, 1], strides = [1, 1]} : vector<8x3xf32> to vector<8x1xf32>
    %13 = vector.extract_strided_slice %11 {offsets = [0, 1], sizes = [8, 1], strides = [1, 1]} : vector<8x3xf32> to vector<8x1xf32>
    %14 = vector.extract_strided_slice %11 {offsets = [0, 2], sizes = [8, 1], strides = [1, 1]} : vector<8x3xf32> to vector<8x1xf32>
    %cst_8 = arith.constant dense<0xFF800000> : vector<1xf32>
    %15 = vector.multi_reduction <maximumf>, %8, %cst_8 [1] : vector<1x256xf32> to vector<1xf32>
    %16 = vector.shape_cast %15 : vector<1xf32> to vector<1x1xf32>
    %17 = vector.broadcast %16 : vector<1x1xf32> to vector<1x256xf32>
    %18 = arith.subf %8, %17 : vector<1x256xf32>
    %19 = math.exp %18 : vector<1x256xf32>
    %cst_9 = arith.constant dense<0.000000e+00> : vector<1xf32>
    %20 = vector.multi_reduction <add>, %19, %cst_9 [1] : vector<1x256xf32> to vector<1xf32>
    %21 = vector.shape_cast %20 : vector<1xf32> to vector<1x1xf32>
    %22 = vector.broadcast %21 : vector<1x1xf32> to vector<1x256xf32>
    %23 = arith.divf %19, %22 : vector<1x256xf32>
    %24 = vector.broadcast %23 : vector<1x256xf32> to vector<4x256xf32>
    %25 = arith.mulf %7, %24 : vector<4x256xf32>
    %cst_10 = arith.constant dense<0.000000e+00> : vector<4xf32>
    %26 = vector.multi_reduction <add>, %25, %cst_10 [1] : vector<4x256xf32> to vector<4xf32>
    %27 = vector.shape_cast %26 : vector<4xf32> to vector<4x1xf32>
    %c0_11 = arith.constant 0 : index
    %c0_12 = arith.constant 0 : index
    %28 = vector.load %arg4[%c0_11, %c0_12] : memref<8x4xf32, #tpu.memory_space<vmem>>, vector<8x4xf32>
    %cst_13 = arith.constant dense<0.000000e+00> : vector<8x1xf32>
    %29 = tpu.matmul %28, %27, %cst_13 {dimension_numbers = #tpu.dot_dimension_numbers<[1], [0], [0], [1], [0, 0, 1, 1], [], []>} : vector<8x4xf32>, vector<4x1xf32>, vector<8x1xf32> -> vector<8x1xf32>
    %30 = arith.addf %29, %12 : vector<8x1xf32>
    %cst_14 = arith.constant dense<0.000000e+00> : vector<1xf32>
    %31 = vector.multi_reduction <add>, %30, %cst_14 [0] : vector<8x1xf32> to vector<1xf32>
    %32 = vector.shape_cast %31 : vector<1xf32> to vector<1x1xf32>
    %cst_15 = arith.constant 8.000000e+00 : f32
    %33 = vector.broadcast %cst_15 : f32 to vector<1x1xf32>
    %34 = arith.divf %32, %33 : vector<1x1xf32>
    %35 = vector.broadcast %34 : vector<1x1xf32> to vector<8x1xf32>
    %36 = arith.subf %30, %35 : vector<8x1xf32>
    %37 = arith.mulf %36, %36 : vector<8x1xf32>
    %cst_16 = arith.constant dense<0.000000e+00> : vector<1xf32>
    %38 = vector.multi_reduction <add>, %37, %cst_16 [0] : vector<8x1xf32> to vector<1xf32>
    %39 = vector.shape_cast %38 : vector<1xf32> to vector<1x1xf32>
    %cst_17 = arith.constant 8.000000e+00 : f32
    %40 = vector.broadcast %cst_17 : f32 to vector<1x1xf32>
    %41 = arith.divf %39, %40 : vector<1x1xf32>
    %42 = vector.broadcast %34 : vector<1x1xf32> to vector<8x1xf32>
    %43 = arith.subf %30, %42 : vector<8x1xf32>
    %cst_18 = arith.constant 9.99999974E-6 : f32
    %44 = vector.broadcast %cst_18 : f32 to vector<1x1xf32>
    %45 = arith.addf %41, %44 : vector<1x1xf32>
    %46 = math.rsqrt %45 : vector<1x1xf32>
    %47 = vector.broadcast %46 : vector<1x1xf32> to vector<8x1xf32>
    %48 = arith.mulf %43, %47 : vector<8x1xf32>
    %49 = arith.mulf %48, %13 : vector<8x1xf32>
    %50 = arith.addf %49, %14 : vector<8x1xf32>
    %51 = arith.negf %50 : vector<8x1xf32>
    %52 = math.exp %51 : vector<8x1xf32>
    %cst_19 = arith.constant 1.000000e+00 : f32
    %53 = vector.broadcast %cst_19 : f32 to vector<8x1xf32>
    %54 = arith.addf %53, %52 : vector<8x1xf32>
    %55 = arith.divf %53, %54 : vector<8x1xf32>
    %cst_20 = arith.constant dense<0.000000e+00> : vector<4xf32>
    %56 = vector.multi_reduction <add>, %10, %cst_20 [1] : vector<4x256xf32> to vector<4xf32>
    %57 = vector.shape_cast %56 : vector<4xf32> to vector<4x1xf32>
    %cst_21 = arith.constant 2.560000e+02 : f32
    %58 = vector.broadcast %cst_21 : f32 to vector<4x1xf32>
    %59 = arith.divf %57, %58 : vector<4x1xf32>
    %60 = vector.broadcast %59 : vector<4x1xf32> to vector<4x256xf32>
    %61 = arith.mulf %9, %60 : vector<4x256xf32>
    %cst_22 = arith.constant dense<0.000000e+00> : vector<256xf32>
    %62 = vector.multi_reduction <add>, %61, %cst_22 [0] : vector<4x256xf32> to vector<256xf32>
    %63 = vector.shape_cast %62 : vector<256xf32> to vector<1x256xf32>
    %64 = arith.negf %63 : vector<1x256xf32>
    %65 = math.exp %64 : vector<1x256xf32>
    %cst_23 = arith.constant 1.000000e+00 : f32
    %66 = vector.broadcast %cst_23 : f32 to vector<1x256xf32>
    %67 = arith.addf %66, %65 : vector<1x256xf32>
    %68 = arith.divf %66, %67 : vector<1x256xf32>
    %69 = vector.broadcast %55 : vector<8x1xf32> to vector<8x256xf32>
    %70 = vector.broadcast %68 : vector<1x256xf32> to vector<8x256xf32>
    %71 = arith.addf %69, %70 : vector<8x256xf32>
    %72 = arith.mulf %71, %1 : vector<8x256xf32>
    %c0_24 = arith.constant 0 : index
    %c0_25 = arith.constant 0 : index
    %c0_26 = arith.constant 0 : index
    %73 = vector.load %arg6[%c0_24, %c0_25, %c0_26] : memref<1x8x256xf32, #tpu.memory_space<vmem>>, vector<1x8x256xf32>
    %74 = vector.shape_cast %73 : vector<1x8x256xf32> to vector<8x256xf32>
    %75 = vector.shape_cast %72 : vector<8x256xf32> to vector<1x8x256xf32>
    tpu.vector_store %arg6[%c0_24, %c0_25, %c0_26], %75 {strides = array<i32>} : memref<1x8x256xf32, #tpu.memory_space<vmem>>, vector<1x8x256xf32>,
    return
  }
  func.func @transform_0(%arg0: i32) -> (i32, i32, i32) {
    %c0_i32 = arith.constant 0 : i32
    %c0_i32_0 = arith.constant 0 : i32
    %c0_i32_1 = arith.constant 0 : i32
    return %arg0, %c0_i32, %c0_i32_0 : i32, i32, i32
  }
  func.func @transform_1(%arg0: i32) -> (i32, i32) {
    %c0_i32 = arith.constant 0 : i32
    %c0_i32_0 = arith.constant 0 : i32
    %c0_i32_1 = arith.constant 0 : i32
    return %c0_i32, %c0_i32_0 : i32, i32
  }
  func.func @transform_2(%arg0: i32) -> (i32, i32) {
    %c0_i32 = arith.constant 0 : i32
    %c0_i32_0 = arith.constant 0 : i32
    %c0_i32_1 = arith.constant 0 : i32
    return %c0_i32, %c0_i32_0 : i32, i32
  }
  func.func @transform_3(%arg0: i32) -> (i32, i32) {
    %c0_i32 = arith.constant 0 : i32
    %c0_i32_0 = arith.constant 0 : i32
    %c0_i32_1 = arith.constant 0 : i32
    return %c0_i32, %c0_i32_0 : i32, i32
  }
  func.func @transform_4(%arg0: i32) -> (i32, i32) {
    %c0_i32 = arith.constant 0 : i32
    %c0_i32_0 = arith.constant 0 : i32
    %c0_i32_1 = arith.constant 0 : i32
    return %c0_i32, %c0_i32_0 : i32, i32
  }
  func.func @transform_5(%arg0: i32) -> (i32, i32, i32) {
    %c0_i32 = arith.constant 0 : i32
    %c0_i32_0 = arith.constant 0 : i32
    %c0_i32_1 = arith.constant 0 : i32
    return %arg0, %c0_i32, %c0_i32_0 : i32, i32, i32
  }
}

</mosaic_0001>

<bundles_post_ra>
// kernel: tpu_custom_call.1
= control target key start
LH: loop header
LB: loop body
LE: loop exit
PB: predicated region body
PF: predicated region fallthrough
CT: control target
= control target key end

     0   :  { %10 = vsyncpa [#allocation3], 0  ;;  %s976_s0 = inlined_call_operand.vmem [shape: f32[2,8,256], index: 0, kind: input, shape index: {}]   ;;  %s977_s1 = inlined_call_operand.vmem [shape: f32[32,8], index: 1, kind: input, shape index: {}]   ;;  %s978_s2 = inlined_call_operand.vmem [shape: f32[32,1], index: 2, kind: input, shape index: {}]   ;;  %s979_s3 = inlined_call_operand.vmem [shape: f32[8,4], index: 3, kind: input, shape index: {}]   ;;  %s980_s4 = inlined_call_operand.vmem [shape: f32[8,3], index: 4, kind: input, shape index: {}]   ;;  %s981_s5 = inlined_call_operand.hbm [shape: f32[2,8,256], index: 5, kind: output, shape index: {}]  }
   0x1   :  { %12 = vsyncpa [#allocation3 + $0x1], 0  ;;  %s815_s18 = smov 0   ;;  %s817_s19 = smov 0  }
   0x2   :  { %s819_s20 = smov 0   ;;  %s821_s21 = smov 0  }
   0x3 LB: > { %s836_s22 = sadd.s32 4294967295, %s778_s21   ;;  %s616_s23 = sadd.s32 4294967294, %s778_s21   ;;  %s778_s21 = sphi %s821_s21, %s987_s21   ;;  %s774_s20 = sphi %s819_s20, %s986_s20   ;;  %s770_s19 = sphi %s817_s19, %s985_s19   ;;  %s766_s18 = sphi %s815_s18, %s984_s18  }
   0x4   : > { %s840_s24 = sadd.s32 1, %s778_s21   ;;  %s135_s25 = sadd.s32 1, %s774_s20 }
   0x5   : > { %s132_s26 = ssub.s32 %s778_s21, %s840_s24  ;;  %p145_p0 = scmp.ne.s32.totalorder %s774_s20, %s770_s19 }
   0x6   : > { %p133_p1 = scmp.eq.s32.totalorder %s132_s26, 0  ;;  %p146_p2 = scmp.eq.s32.totalorder %s836_s22, 1 }
   0x7   : > { %p151_p3 = scmp.ne.s32.totalorder %s770_s19, %s766_s18  ;;  %p152_p4 = scmp.eq.s32.totalorder %s616_s23, 1 }
   0x8   : > { %s851_s27 = scalar_select %p133_p1, %s774_s20, %s135_s25  }
   0x9   : > { %p853_p5 = por %p146_p2, %p145_p0  ;;  %p857_p6 = por %p152_p4, %p151_p3 }
   0xa   : > { %p619_p7 = scmp.ge.s32.totalorder %s778_s21, 1  ;;  %p190_p8 = scmp.lt.s32.totalorder %s778_s21, 3 }
   0xc   : > { %p191_p9 = pnand %p619_p7, %p190_p8 }
   0xd   : > { %p218_p10 = scmp.lt.s32.totalorder (!%p191_p9), %s836_s22, 1  ;;  %s781_s6 = smov (!%p191_p9), 126  }
   0xe   : > { %194 = sbr.rel (%p191_p9) target bundleno = 902 (0x386), region = 40  ;;  %s782_s13 = smov (!%p191_p9), 127  }
   0xf   : > { %s215_s16 = sand.u32 (!%p191_p9), 1, %s770_s19   ;;  %s642_s23 = sshll.u32 (!%p191_p9), %s836_s22, 4 }
  0x10   : > { %s620_s17 = sshll.u32 (!%p191_p9), %s215_s16, 4  ;;  %s552_s30 = scalar_lea.hbm (!%p191_p9), %s981_s5, %s642_s23 }
  0x13   : > { %v230_v0 = vld [vmem:[%s978_s2 + $0x8] sm:$0xff]  ;;  %v780_v1 = vmov 0   ;;  %s219_s7 = scalar_select %p218_p10, %s836_s22, 1  ;;  %vm253_vm0 = vcmask 64512   ;;  %vm325_vm1 = vcmask 1040384   ;;  %v225_v13 = vld [vmem:[%s977_s1] sm:$0xff] }
  0x14   : > { %689 = vset.pattern.permute.xlu0 %v780_v1  ;;  %690 = vset.pattern.permute.xlu1 %v780_v1  ;;  %v226_v2 = vld [vmem:[%s977_s1 + $0x8] sm:$0xff]  ;;  %v227_v14 = vld [vmem:[%s977_s1 + $0x10] sm:$0xff]  ;;  %v229_v25 = vld [vmem:[%s978_s2] sm:$0xff]  ;;  %vm362_vm6 = vcmask 1043456   ;;  %vm369_vm7 = vcmask 31744   ;;  %vm396_vm8 = vcmask 7168  }
  0x15   : > { %240 = vperm.xlu0 %689, %v230_v0   ;;  %691 = vset.pattern.permute.xlu2 %v780_v1  ;;  %s641_s8 = sshll.u32 %s219_s7, 4  ;;  %v904_v26 = vld [vmem:[%s980_s4] sm:$0xff]  ;;  %v231_v27 = vld [vmem:[%s978_s2 + $0x10] sm:$0xff]  ;;  %v228_v28 = vld [vmem:[%s977_s1 + $0x18] sm:$0xff]  ;;  %s556_s7 = sshll.u32 %s552_s30, 4  ;;  %s557_s7 = int_to_ptr.hbm [resolvable:$true] %s556_s7 }
  0x16   : > { %s222_s11 = scalar_lea.vmem %s976_s0, %s641_s8  ;;  %v232_v54 = vld [vmem:[%s978_s2 + $0x18] sm:$0xff]  ;;  %v368_v57 = vld [vmem:[%s979_s3] sm:$0xff]  ;;  %s541_s8 = scalar_lea.sflag [#allocation3], %s215_s16 }
  0x17   : > { %v874_v3 = vld [vmem:[%s222_s11] sm:$0xff]  ;;  %v876_v4 = vld [vmem:[%s222_s11 + $0x8] sm:$0xff]  ;;  %s730_s9 = sshra.s32 %s557_s7, 4  ;;  %s731_s9 = int_to_ptr.hbm [resolvable:$true] %s730_s9 }
  0x18   : > { %643 = vmatpush.msra.mxu3 %v874_v3  ;;  %644 = vmatpush.msra.mxu1 %v876_v4  ;;  %s732_s10 = scalar_lea.hbm %s731_s9, 16  ;;  %p737_p0 = scmp.lt.s32.totalorder %s731_s9, %s981_s5 }
  0x19   : > { %624 = vmatmul.msk.f32.vlgmr.msra.gmra.mxu3 %vm253_vm0, %v226_v2  ;;  %628 = vmatmul.msk.f32.vlgmr.msra.gmra.mxu1 %vm253_vm0, %v226_v2  ;;  %p733_p11 = scmp.ne.s32.totalorder %s731_s9, %s732_s10 }
  0x1a   : > { %281 = vmatpush.msra.mxu0 %v874_v3 }
  0x1b   : > { %623 = vmatmul.msk.f32.vlgmr.msra.gmra.mxu0 %vm253_vm0, %v225_v13  ;;  %p734_p12 = pnand %p733_p11, %p853_p5 }
  0x1c   : > { %310 = vmatpush.msrb.mxu0 %v876_v4 }
  0x1d   : > { %p735_p13 = pneg %p734_p12 }
  0x21   : > { %625 = vmatmul.msk.f32.gmra.mxu3 %vm253_vm0, %v227_v14  ;;  %629 = vmatmul.msk.f32.gmra.mxu1 %vm253_vm0, %v227_v14 }
  0x23   : > { %627 = vmatmul.msk.f32.vlgmr.msrb.gmra.mxu0 %vm253_vm0, %v225_v13 }
  0x29   : > { %626 = vmatmul.msk.f32.gmra.mxu3 %vm253_vm0, %v228_v28  ;;  %630 = vmatmul.msk.f32.gmra.mxu1 %vm253_vm0, %v228_v28 }
  0x87   : > { %v241_v5 = vpop.permute.xlu0 %240 }
  0x96   : > { %v315_v6 = vpop.f32.mrf.mxu1 }
  0x97   : > { %v316_v7 = vadd.f32 %v315_v6, %v241_v5 }
  0x98   : > { %v283_v35 = vpop.f32.mrf.mxu0 }
  0x99   : > { %v327_v10 = vsel %vm325_vm1, %v316_v7, -inf }
  0x9c   : > { %v286_v8 = vpop.f32.mrf.mxu3 }
  0x9d   : > { %v287_v9 = vadd.f32 %v286_v8, %v241_v5  ;;  %v783_v5 = vmov 8.0  }
  0x9e   : > { %v923_v56 = vpop.f32.mrf.mxu1 }
  0x9f   : > { %v326_v11 = vsel %vm325_vm1, %v287_v9, -inf }
  0xa0   : > { %v328_v12 = vmax.f32 %v326_v11, %v327_v10  ;;  %v312_v43 = vpop.f32.mrf.mxu0 }
  0xa2   : > { %329 = vmax.xlane.f32.xlu0 %v328_v12 }
  0xa4   : > { %v921_v55 = vpop.f32.mrf.mxu3 }
  0xa6   : > { %v321_v60 = vpop.f32.mrf.mxu1 }
  0xac   : > { %v292_v59 = vpop.f32.mrf.mxu3 }
 0x115   : > { %v330_v15 = vpop.xlane.xlu0 %329 }
 0x116   : > { %v331_v16 = vsub.f32 %v287_v9, %v330_v15  ;;  %v332_v17 = vsub.f32 %v316_v7, %v330_v15 }
 0x118   : > { %v333_v18 = vmul.f32 1.442695, %v331_v16  ;;  %v335_v19 = vmul.f32 1.442695, %v332_v17 }
 0x11a   : > { %692 = vpow2.f32 %v333_v18 }
 0x11b   : > { %694 = vpow2.f32 %v335_v19 }
 0x120   : > { %v693_v20 = vpop.eup %692 }
 0x121   : > { %v695_v21 = vpop.eup %694  ;;  %v337_v22 = vsel %vm325_vm1, %v693_v20, 0.0 }
 0x122   : > { %v338_v23 = vsel %vm325_vm1, %v695_v21, 0.0 }
 0x123   : > { %v339_v24 = vadd.f32 %v338_v23, %v337_v22 }
 0x125   : > { %340 = vadd.xlane.f32.xlu1 %v339_v24 }
 0x13e   : > { %235 = vperm.xlu1 %690, %v229_v25  }
 0x146   : > { %439 = vrot.lane.b32.xlu1 %v904_v26, %s781_s6  ;;  %s217_s6 = scalar_lea.vmem [#allocation2], %s620_s17 }
 0x147   : > { %s554_s22 = sshll.u32 %s217_s6, 4  ;;  %s555_s22 = int_to_ptr.vmem [resolvable:$true] %s554_s22 }
 0x14e   : > { %245 = vperm.xlu1 %690, %v231_v27  }
 0x198   : > { %v341_v29 = vpop.xlane.xlu1 %340 }
 0x199   : > { %696 = vrcp.f32 %v341_v29  ;;  %v353_v34 = vand.u32 2147483648, %v341_v29  ;;  %v351_v36 = vand.u32 2147483647, %v341_v29  ;;  %vm347_vm3 = vweird.f32 %v341_v29 }
 0x19a   : > { %698 = vrcp.f32 %v783_v5 }
 0x19b   : > { %v354_v38 = vor.u32 1.1754944e-38, %v353_v34  ;;  %vm352_vm5 = vcmp.eq.f32.partialorder %v351_v36, 8.507059e+37 }
 0x19f   : > { %v697_v30 = vpop.eup %696 }
 0x1a0   : > { %v343_v31 = vmul.f32 %v697_v30, %v341_v29  ;;  %vm348_vm2 = vweird.f32 %v697_v30  ;;  %v699_v6 = vpop.eup %698 }
 0x1a1   : > { %vm349_vm4 = vmor %vm347_vm3, %vm348_vm2  ;;  %v405_v7 = vmul.f32 8.0, %v699_v6  ;;  %vm409_vm9 = vweird.f32 %v699_v6 }
 0x1a2   : > { %v344_v32 = vsub.f32 1.0, %v343_v31 }
 0x1a3   : > { %v406_v10 = vsub.f32 1.0, %v405_v7 }
 0x1a4   : > { %v345_v33 = vmul.f32 %v697_v30, %v344_v32 }
 0x1a5   : > { %v407_v13 = vmul.f32 %v699_v6, %v406_v10 }
 0x1a6   : > { %v346_v37 = vadd.f32 %v697_v30, %v345_v33 }
 0x1a7   : > { %v408_v16 = vadd.f32 %v699_v6, %v407_v13 }
 0x1a8   : > { %v350_v39 = vsel %vm349_vm4, %v697_v30, %v346_v37 }
 0x1a9   : > { %v355_v40 = vsel %vm352_vm5, %v354_v38, %v350_v39  ;;  %v410_v19 = vsel %vm409_vm9, %v699_v6, %v408_v16 }
 0x1aa   : > { %v357_v41 = vmul.f32 %v695_v21, %v355_v40  ;;  %v356_v42 = vmul.f32 %v693_v20, %v355_v40 }
 0x1ac   : > { %v359_v47 = vperm.slane %v357_v41, 0  ;;  %v358_v48 = vperm.slane %v356_v42, 0 }
 0x1b0   : > { %v236_v44 = vpop.permute.xlu1 %235 }
 0x1b1   : > { %v284_v45 = vadd.f32 %v283_v35, %v236_v44  ;;  %v313_v46 = vadd.f32 %v312_v43, %v236_v44 }
 0x1b3   : > { %v361_v49 = vmul.f32 %v359_v47, %v313_v46  ;;  %v360_v50 = vmul.f32 %v358_v48, %v284_v45 }
 0x1b5   : > { %v363_v51 = vsel %vm362_vm6, %v360_v50, 0.0  ;;  %v364_v52 = vsel %vm362_vm6, %v361_v49, 0.0 }
 0x1b6   : > { %v365_v53 = vadd.f32 %v364_v52, %v363_v51 }
 0x1b8   : > { %366 = vadd.xlane.f32.xlu2 %v365_v53  ;;  %v440_v43 = vpop.permute.xlu1 %439 }
 0x1c0   : > { %v246_v6 = vpop.permute.xlu1 %245 }
 0x1d0   : > { %250 = vperm.xlu2 %691, %v232_v54  }
 0x1d8   : > { %435 = vrot.lane.b32.xlu2 %v904_v26, %s782_s13  ;;  %s736_s13 = scalar_lea.hbm %s981_s5, 32 }
 0x1d9   : > { %p738_p1 = scmp.lt.s32.totalorder %s736_s13, %s732_s10 }
 0x1db   : > { %p739_p2 = por %p738_p1, %p737_p0 }
 0x1dd   : > { %p740_p3 = pnand %p739_p2, %p735_p13 }
 0x22b   : > { %v367_v58 = vpop.xlane.xlu2 %366 }
 0x22c   : > { %631 = vmatpush.msk.msra.mxu2 %vm362_vm6, %v367_v58 }
 0x22d   : > { %632 = vmatmul.msk.f32.vlgmr.msra.gmra.mxu2 %vm369_vm7, %v368_v57 }
 0x233   : > { %v251_v61 = vpop.permute.xlu2 %250 }
 0x234   : > { %v293_v62 = vadd.f32 %v292_v59, %v251_v61  ;;  %v322_v63 = vadd.f32 %v321_v60, %v251_v61  ;;  %v784_v60 = vmov 256.0  }
 0x236   : > { %v462_v0 = vsel %vm362_vm6, %v293_v62, 0.0  ;;  %v463_v1 = vsel %vm362_vm6, %v322_v63, 0.0 }
 0x237   : > { %v464_v2 = vadd.f32 %v463_v1, %v462_v0 }
 0x239   : > { %465 = vadd.xlane.f32.xlu2 %v464_v2 }
 0x23b   : > { %v436_v41 = vpop.permute.xlu2 %435 }
 0x2ac   : > { %v466_v5 = vpop.xlane.xlu2 %465 }
 0x2b0   : > { %v393_v8 = vpop.f32.mrf.mxu2 }
 0x2b1   : > { %v394_v9 = vadd.f32 %v393_v8, %v904_v26  ;;  %v290_v8 = vadd.f32 %v921_v55, %v246_v6 }
 0x2b3   : > { %v397_v11 = vsel %vm396_vm8, %v394_v9, 0.0 }
 0x2b4   : > { %v398_v12 = vrot.slane %v397_v11, 4 }
 0x2b6   : > { %v399_v14 = vadd.f32 %v398_v12, %v397_v11 }
 0x2b8   : > { %v400_v15 = vrot.slane %v399_v14, 2 }
 0x2ba   : > { %v401_v17 = vadd.f32 %v400_v15, %v399_v14 }
 0x2bc   : > { %v402_v18 = vrot.slane %v401_v17, 1 }
 0x2be   : > { %v403_v20 = vadd.f32 %v402_v18, %v401_v17 }
 0x2c0   : > { %v411_v21 = vmul.f32 %v410_v19, %v403_v20 }
 0x2c2   : > { %v412_v22 = vsub.f32 %v394_v9, %v411_v21  ;;  %v319_v9 = vadd.f32 %v923_v56, %v246_v6 }
 0x2c4   : > { %v413_v23 = vmul.f32 %v412_v22, %v412_v22 }
 0x2c6   : > { %v414_v24 = vsel %vm396_vm8, %v413_v23, 0.0 }
 0x2c7   : > { %v415_v25 = vrot.slane %v414_v24, 4 }
 0x2c9   : > { %v416_v26 = vadd.f32 %v415_v25, %v414_v24 }
 0x2cb   : > { %v417_v27 = vrot.slane %v416_v26, 2 }
 0x2cd   : > { %v418_v28 = vadd.f32 %v417_v27, %v416_v26 }
 0x2cf   : > { %v419_v29 = vrot.slane %v418_v28, 1 }
 0x2d1   : > { %v420_v30 = vadd.f32 %v419_v29, %v418_v28 }
 0x2d3   : > { %v421_v31 = vmul.f32 %v420_v30, %v410_v19 }
 0x2d5   : > { %v422_v32 = vadd.f32 1e-05, %v421_v31 }
 0x2d7   : > { %700 = vrsqrt.f32 %v422_v32  ;;  %vm429_vm11 = vweird.f32 %v422_v32 }
 0x2dd   : > { %v701_v33 = vpop.eup %700 }
 0x2de   : > { %v424_v34 = vmul.f32 %v701_v33, %v422_v32  ;;  %vm430_vm10 = vweird.f32 %v701_v33 }
 0x2df   : > { %vm431_vm12 = vmor %vm429_vm11, %vm430_vm10 }
 0x2e0   : > { %v425_v35 = vmul.f32 %v701_v33, %v424_v34 }
 0x2e2   : > { %v426_v36 = vmul.f32 0.5, %v425_v35 }
 0x2e4   : > { %v427_v37 = vsub.f32 1.5, %v426_v36 }
 0x2e6   : > { %v428_v38 = vmul.f32 %v701_v33, %v427_v37 }
 0x2e8   : > { %v432_v39 = vsel %vm431_vm12, %v701_v33, %v428_v38 }
 0x2e9   : > { %v433_v40 = vmul.f32 %v432_v39, %v412_v22 }
 0x2eb   : > { %v438_v42 = vmul.f32 %v436_v41, %v433_v40 }
 0x2ed   : > { %v442_v44 = vadd.f32 %v440_v43, %v438_v42 }
 0x2ef   : > { %v633_v45 = vmul.f32 -1.442695, %v442_v44 }
 0x2f1   : > { %702 = vpow2.f32 %v633_v45 }
 0x2f7   : > { %v703_v46 = vpop.eup %702 }
 0x2f8   : > { %v446_v47 = vadd.f32 1.0, %v703_v46 }
 0x2fa   : > { %704 = vrcp.f32 %v446_v47  ;;  %v458_v51 = vand.u32 2147483648, %v446_v47  ;;  %v456_v53 = vand.u32 2147483647, %v446_v47  ;;  %vm452_vm14 = vweird.f32 %v446_v47 }
 0x2fb   : > { %706 = vrcp.f32 %v784_v60 }
 0x2fc   : > { %v459_v57 = vor.u32 1.1754944e-38, %v458_v51  ;;  %vm457_vm0 = vcmp.eq.f32.partialorder %v456_v53, 8.507059e+37 }
 0x300   : > { %v705_v48 = vpop.eup %704 }
 0x301   : > { %v448_v49 = vmul.f32 %v705_v48, %v446_v47  ;;  %vm453_vm13 = vweird.f32 %v705_v48  ;;  %v707_v61 = vpop.eup %706 }
 0x302   : > { %vm454_vm15 = vmor %vm452_vm14, %vm453_vm13  ;;  %v468_v62 = vmul.f32 256.0, %v707_v61  ;;  %vm472_vm1 = vweird.f32 %v707_v61 }
 0x303   : > { %v449_v50 = vsub.f32 1.0, %v448_v49 }
 0x304   : > { %v469_v63 = vsub.f32 1.0, %v468_v62 }
 0x305   : > { %v450_v52 = vmul.f32 %v705_v48, %v449_v50 }
 0x306   : > { %v470_v0 = vmul.f32 %v707_v61, %v469_v63 }
 0x307   : > { %v451_v54 = vadd.f32 %v705_v48, %v450_v52 }
 0x308   : > { %v471_v1 = vadd.f32 %v707_v61, %v470_v0 }
 0x309   : > { %v455_v58 = vsel %vm454_vm15, %v705_v48, %v451_v54 }
 0x30a   : > { %v460_v59 = vsel %vm457_vm0, %v459_v57, %v455_v58  ;;  %v473_v2 = vsel %vm472_vm1, %v707_v61, %v471_v1 }
 0x30b   : > { %531 = vperm.xlu1 %690, %v460_v59   ;;  %v474_v7 = vmul.f32 %v473_v2, %v466_v5 }
 0x30d   : > { %v475_v10 = vmul.f32 %v474_v7, %v290_v8  ;;  %v476_v11 = vmul.f32 %v474_v7, %v319_v9 }
 0x30f   : > { %v477_v12 = vsel %vm362_vm6, %v475_v10, 0.0  ;;  %v484_v13 = vsel %vm362_vm6, %v476_v11, 0.0 }
 0x310   : > { %v478_v14 = vrot.slane %v477_v12, 4  ;;  %v485_v15 = vrot.slane %v484_v13, 4 }
 0x312   : > { %v479_v16 = vadd.f32 %v478_v14, %v477_v12  ;;  %v486_v17 = vadd.f32 %v485_v15, %v484_v13 }
 0x314   : > { %v480_v18 = vrot.slane %v479_v16, 2  ;;  %v487_v19 = vrot.slane %v486_v17, 2 }
 0x316   : > { %v481_v20 = vadd.f32 %v480_v18, %v479_v16  ;;  %v488_v21 = vadd.f32 %v487_v19, %v486_v17 }
 0x318   : > { %v482_v22 = vrot.slane %v481_v20, 1  ;;  %v489_v23 = vrot.slane %v488_v21, 1 }
 0x31a   : > { %v483_v24 = vadd.f32 %v482_v22, %v481_v20  ;;  %v490_v55 = vadd.f32 %v489_v23, %v488_v21 }
 0x31c   : > { %v634_v25 = vmul.f32 -1.442695, %v483_v24  ;;  %v635_v56 = vmul.f32 -1.442695, %v490_v55 }
 0x31e   : > { %708 = vpow2.f32 %v634_v25 }
 0x31f   : > { %710 = vpow2.f32 %v635_v56 }
 0x324   : > { %v709_v26 = vpop.eup %708 }
 0x325   : > { %v711_v27 = vpop.eup %710  ;;  %v497_v28 = vadd.f32 1.0, %v709_v26 }
 0x326   : > { %v498_v29 = vadd.f32 1.0, %v711_v27 }
 0x327   : > { %712 = vrcp.f32 %v497_v28  ;;  %vm504_vm4 = vweird.f32 %v497_v28  ;;  %v510_v40 = vand.u32 2147483648, %v497_v28  ;;  %v508_v42 = vand.u32 2147483647, %v497_v28 }
 0x328   : > { %714 = vrcp.f32 %v498_v29  ;;  %v525_v41 = vand.u32 2147483648, %v498_v29  ;;  %vm519_vm6 = vweird.f32 %v498_v29  ;;  %v523_v43 = vand.u32 2147483647, %v498_v29 }
 0x329   : > { %v511_v46 = vor.u32 1.1754944e-38, %v510_v40  ;;  %vm509_vm8 = vcmp.eq.f32.partialorder %v508_v42, 8.507059e+37 }
 0x32a   : > { %v526_v47 = vor.u32 1.1754944e-38, %v525_v41  ;;  %vm524_vm9 = vcmp.eq.f32.partialorder %v523_v43, 8.507059e+37 }
 0x32d   : > { %v713_v30 = vpop.eup %712 }
 0x32e   : > { %v715_v31 = vpop.eup %714  ;;  %v500_v32 = vmul.f32 %v713_v30, %v497_v28  ;;  %vm505_vm2 = vweird.f32 %v713_v30 }
 0x32f   : > { %v515_v33 = vmul.f32 %v715_v31, %v498_v29  ;;  %vm520_vm3 = vweird.f32 %v715_v31  ;;  %vm506_vm5 = vmor %vm504_vm4, %vm505_vm2 }
 0x330   : > { %v501_v34 = vsub.f32 1.0, %v500_v32  ;;  %vm521_vm7 = vmor %vm519_vm6, %vm520_vm3 }
 0x331   : > { %v516_v35 = vsub.f32 1.0, %v515_v33 }
 0x332   : > { %v502_v36 = vmul.f32 %v713_v30, %v501_v34 }
 0x333   : > { %v517_v37 = vmul.f32 %v715_v31, %v516_v35 }
 0x334   : > { %v503_v38 = vadd.f32 %v713_v30, %v502_v36 }
 0x335   : > { %v518_v39 = vadd.f32 %v715_v31, %v517_v37 }
 0x336   : > { %v507_v44 = vsel %vm506_vm5, %v713_v30, %v503_v38 }
 0x337   : > { %v522_v45 = vsel %vm521_vm7, %v715_v31, %v518_v39  ;;  %v512_v49 = vsel %vm509_vm8, %v511_v46, %v507_v44 }
 0x338   : > { %v527_v50 = vsel %vm524_vm9, %v526_v47, %v522_v45 }
 0x37d   : > { %v532_v48 = vpop.permute.xlu1 %531 }
 0x37e   : > { %v534_v51 = vadd.f32 %v532_v48, %v512_v49  ;;  %v535_v52 = vadd.f32 %v532_v48, %v527_v50 }
 0x380   : > { %v536_v53 = vmul.f32 %v534_v51, %v874_v3  ;;  %v537_v54 = vmul.f32 %v535_v52, %v876_v4 }
 0x382   : > { %538 = vst [vmem:[%s217_s6] sm:$0xff] %v536_v53 }
 0x383   : > { %539 = vst [vmem:[%s217_s6 + $0x8] sm:$0xff] %v537_v54 }
 0x384   : > { %743 = shalt.err (!%p740_p3)
}
 0x385   : > { %645 = dma.vmem_to_hbm [thread:$0]  (%p853_p5), %s555_s22, 256, %s557_s7, %s541_s8  }
 0x386 PF: > { %p651_p4 = scmp.ge.s32.totalorder %s778_s21, 2  ;;  %s568_s16 = sand.u32 1, %s766_s18  }
 0x387   : > { %s569_s17 = scalar_lea.sflag [#allocation3], %s568_s16 }
 0x388   : > { %p648_p7 = pnand %p651_p4, %p857_p6 }
 0x38a   : > { %p649_p8 = pneg %p648_p7 }
 0x38c   : > { %761 = dma.done.wait (%p649_p8), %s569_s17, 256  }
 0x38d   : > { %763 = vsyncadd (%p649_p8), %s569_s17, 4294967040  ;;  %p15_p9 = scmp.ge.s32.totalorder %s840_s24, 4   ;;  %s984_s18 = smov %s770_s19 }
 0x38e   : > { %s985_s19 = smov %s774_s20  ;;  %s986_s20 = smov %s851_s27 }
 0x38f   : > { %s987_s21 = smov %s840_s24  ;;  %17 = sbr.rel (!%p15_p9) target bundleno = 3 (0x3), region = 75 }
 0x394   :  { %575 = vsyncpa [#allocation3], 1 }
 0x395   :  { %577 = vsyncpa [#allocation3 + $0x1], 1 }

</bundles_post_ra>
